<compile_context>
chip_gen: v7x
topology: tpu7x:2x2x1
jax: 0.10.0
libtpu: 0.0.40
codegen_flags: <defaults>
</compile_context>

<pallas_src>
import jax
import jax.numpy as jnp
from jax.experimental import pallas as pl
from jax.experimental.pallas import tpu as pltpu


def cfc_kernel(x_ref, h_ref, t_ref,
               wx_ref, wh_ref,
               whead_ref, bhead_ref,
               out_ref):
    hid = out_ref.shape[1]

    # Folded backbone: (x | h) @ (w0 @ w1)  ==  x @ wx + h @ wh
    z = (jnp.dot(x_ref[...], wx_ref[...], preferred_element_type=jnp.float32)
         + jnp.dot(h_ref[...], wh_ref[...], preferred_element_type=jnp.float32))

    # BatchNorm1d, training mode: biased batch stats, weight=1, bias=0, eps=1e-5.
    # Single-pass variance: E[z^2] - E[z]^2 (two independent sublane reductions).
    mean = jnp.mean(z, axis=0, keepdims=True)
    var = jnp.mean(z * z, axis=0, keepdims=True) - mean * mean
    z = (z - mean) * jax.lax.rsqrt(var + 1e-5)

    # LeakyReLU (default negative_slope = 0.01)
    z = jnp.where(z >= 0, z, 0.01 * z)

    # Fused heads: one (B, hid) x (hid, 4*hid) matmul (lane-dense 4*hid result),
    # then static lane slices for g / f / h / tau.
    y = jnp.dot(z, whead_ref[...], preferred_element_type=jnp.float32) + bhead_ref[...]
    g = jnp.tanh(y[:, 0 * hid:1 * hid])
    f = y[:, 1 * hid:2 * hid]
    hh = jnp.tanh(y[:, 2 * hid:3 * hid])
    tau = y[:, 3 * hid:4 * hid]

    t = t_ref[...]                                   # (B, 1) broadcast over hidden
    sigma = jax.nn.sigmoid((tau + f) * t)
    out_ref[...] = (hh * (1.0 - sigma) + g * sigma).astype(out_ref.dtype)


def pack_cfc_params(params, in_features):
    """Fold/fuse raw CFCCell parameters into the kernel's packed operand set."""
    w01 = params["w0"] @ params["w1"]                # (in+hid, hid): fold the two bias-free linears
    wx = w01[:in_features, :]                        # (in, hid)
    wh = w01[in_features:, :]                        # (hid, hid)
    whead = jnp.concatenate(
        [params["wg"], params["wf"], params["wh"], params["wt"]], axis=1)   # (hid, 4*hid)
    bhead = jnp.concatenate(
        [params["bg"], params["bf"], params["bh"], params["bt"]], axis=1)   # (1, 4*hid)
    return wx, wh, whead, bhead


def _full_block_spec(arr):
    nd = arr.ndim
    return pl.BlockSpec(arr.shape, lambda *_, n=nd: (0,) * n)


def cfc_cell_forward(x, h, t, packed):
    """x: (B, in), h: (B, hid), t: (B, 1) or (B,). Returns h_new: (B, hid)."""
    B = x.shape[0]
    hid = h.shape[1]
    wx, wh, whead, bhead = packed
    t = jnp.asarray(t).reshape(B, 1).astype(x.dtype)

    operands = (x, h, t, wx, wh, whead, bhead)

    in_specs = [_full_block_spec(op) for op in operands]
    out_spec = pl.BlockSpec((B, hid), lambda *_: (0, 0))

    # VMEM budget from the actual buffers (double-buffer factor + headroom),
    # with a floor well under every chip's scoped default.
    operand_bytes = sum(op.size * op.dtype.itemsize for op in operands)
    out_bytes = B * hid * jnp.dtype(x.dtype).itemsize
    vmem_limit = int(max(4 * 1024 * 1024, 8 * (operand_bytes + out_bytes)))

    return pl.pallas_call(
        cfc_kernel,
        out_shape=jax.ShapeDtypeStruct((B, hid), x.dtype),
        in_specs=in_specs,
        out_specs=out_spec,
        compiler_params=pltpu.CompilerParams(vmem_limit_bytes=vmem_limit),
    )(*operands)


def _xavier_uniform(key, fan_in, fan_out, shape):
    bound = (6.0 / (fan_in + fan_out)) ** 0.5
    return jax.random.uniform(key, shape, jnp.float32, minval=-bound, maxval=bound)


def init_cfc_params(key, in_features, hidden_features):
    """Deterministic synthetic parameters mirroring CFCCell.__init__ shapes.

    Linear weights are stored pre-transposed as (in, out). Biases (PyTorch's
    default Linear init, untouched by _init_weights) are shaped (1, out).
    """
    keys = jax.random.split(key, 10)
    hf = hidden_features
    inhf = in_features + hf
    bb = 1.0 / (hf ** 0.5)
    return {
        "w0": _xavier_uniform(keys[0], inhf, hf, (inhf, hf)),
        "w1": _xavier_uniform(keys[1], hf, hf, (hf, hf)),
        "wg": _xavier_uniform(keys[2], hf, hf, (hf, hf)),
        "bg": jax.random.uniform(keys[3], (1, hf), jnp.float32, -bb, bb),
        "wf": _xavier_uniform(keys[4], hf, hf, (hf, hf)),
        "bf": jax.random.uniform(keys[5], (1, hf), jnp.float32, -bb, bb),
        "wh": _xavier_uniform(keys[6], hf, hf, (hf, hf)),
        "bh": jax.random.uniform(keys[7], (1, hf), jnp.float32, -bb, bb),
        "wt": _xavier_uniform(keys[8], hf, hf, (hf, hf)),
        "bt": jax.random.uniform(keys[9], (1, hf), jnp.float32, -bb, bb),
    }


def _reference_forward(x, h, t, params):
    """Pure-JAX reference mirroring the PyTorch forward (training-mode BN),
    using the ORIGINAL (unfolded, unfused) parameters — validates both the
    backbone fold and the head fusion."""
    xh = jnp.concatenate([x, h], axis=1)
    z = xh @ params["w0"]
    z = z @ params["w1"]
    mean = jnp.mean(z, axis=0, keepdims=True)
    var = jnp.mean((z - mean) ** 2, axis=0, keepdims=True)
    z = (z - mean) / jnp.sqrt(var + 1e-5)
    z = jnp.where(z >= 0, z, 0.01 * z)
    g = jnp.tanh(z @ params["wg"] + params["bg"])
    f = z @ params["wf"] + params["bf"]
    hh = jnp.tanh(z @ params["wh"] + params["bh"])
    tau = z @ params["wt"] + params["bt"]
    sigma = jax.nn.sigmoid((tau + f) * t.reshape(-1, 1))
    return hh * (1.0 - sigma) + g * sigma


if __name__ == "__main__":
    B, IN, HID = 8, 16, 32

    key = jax.random.PRNGKey(0)
    kx, kh, kt, kp = jax.random.split(key, 4)
    x = jax.random.normal(kx, (B, IN), jnp.float32)
    h = jax.random.normal(kh, (B, HID), jnp.float32)
    t = jax.random.uniform(kt, (B, 1), jnp.float32, minval=0.1, maxval=2.0)
    params = init_cfc_params(kp, IN, HID)
    packed = pack_cfc_params(params, IN)

    h_new = cfc_cell_forward(x, h, t, packed)
    h_new = jax.block_until_ready(h_new)

    ref = _reference_forward(x, h, t, params)
    assert h_new.shape == (B, HID)
    assert jnp.allclose(h_new, ref, atol=1e-4, rtol=1e-3), "mismatch vs reference"

    print("KERNEL_OK")
</pallas_src>

<mosaic_0001>
module attributes {stable_mosaic.version = 11 : i64} {
  func.func @cfc_kernel(%arg0: memref<8x16xf32, #tpu.memory_space<vmem>>, %arg1: memref<8x32xf32, #tpu.memory_space<vmem>>, %arg2: memref<8x1xf32, #tpu.memory_space<vmem>>, %arg3: memref<16x32xf32, #tpu.memory_space<vmem>>, %arg4: memref<32x32xf32, #tpu.memory_space<vmem>>, %arg5: memref<32x128xf32, #tpu.memory_space<vmem>>, %arg6: memref<1x128xf32, #tpu.memory_space<vmem>>, %arg7: memref<8x32xf32, #tpu.memory_space<vmem>>) attributes {dimension_semantics = [], scalar_prefetch = 0 : i64, scratch_operands = 0 : i64, tpu.core_type = #tpu.core_type<tc>} {
    %c0 = arith.constant 0 : index
    %c0_0 = arith.constant 0 : index
    %0 = vector.load %arg0[%c0, %c0_0] : memref<8x16xf32, #tpu.memory_space<vmem>>, vector<8x16xf32>
    %c0_1 = arith.constant 0 : index
    %c0_2 = arith.constant 0 : index
    %1 = vector.load %arg3[%c0_1, %c0_2] : memref<16x32xf32, #tpu.memory_space<vmem>>, vector<16x32xf32>
    %cst = arith.constant dense<0.000000e+00> : vector<8x32xf32>
    %2 = tpu.matmul %0, %1, %cst {dimension_numbers = #tpu.dot_dimension_numbers<[1], [0], [0], [1], [0, 0, 1, 1], [], []>} : vector<8x16xf32>, vector<16x32xf32>, vector<8x32xf32> -> vector<8x32xf32>
    %c0_3 = arith.constant 0 : index
    %c0_4 = arith.constant 0 : index
    %3 = vector.load %arg1[%c0_3, %c0_4] : memref<8x32xf32, #tpu.memory_space<vmem>>, vector<8x32xf32>
    %c0_5 = arith.constant 0 : index
    %c0_6 = arith.constant 0 : index
    %4 = vector.load %arg4[%c0_5, %c0_6] : memref<32x32xf32, #tpu.memory_space<vmem>>, vector<32x32xf32>
    %cst_7 = arith.constant dense<0.000000e+00> : vector<8x32xf32>
    %5 = tpu.matmul %3, %4, %cst_7 {dimension_numbers = #tpu.dot_dimension_numbers<[1], [0], [0], [1], [0, 0, 1, 1], [], []>} : vector<8x32xf32>, vector<32x32xf32>, vector<8x32xf32> -> vector<8x32xf32>
    %6 = arith.addf %2, %5 : vector<8x32xf32>
    %cst_8 = arith.constant dense<0.000000e+00> : vector<32xf32>
    %7 = vector.multi_reduction <add>, %6, %cst_8 [0] : vector<8x32xf32> to vector<32xf32>
    %8 = vector.shape_cast %7 : vector<32xf32> to vector<1x32xf32>
    %cst_9 = arith.constant 8.000000e+00 : f32
    %9 = vector.broadcast %cst_9 : f32 to vector<1x32xf32>
    %10 = arith.divf %8, %9 : vector<1x32xf32>
    %11 = arith.mulf %6, %6 : vector<8x32xf32>
    %cst_10 = arith.constant dense<0.000000e+00> : vector<32xf32>
    %12 = vector.multi_reduction <add>, %11, %cst_10 [0] : vector<8x32xf32> to vector<32xf32>
    %13 = vector.shape_cast %12 : vector<32xf32> to vector<1x32xf32>
    %cst_11 = arith.constant 8.000000e+00 : f32
    %14 = vector.broadcast %cst_11 : f32 to vector<1x32xf32>
    %15 = arith.divf %13, %14 : vector<1x32xf32>
    %16 = arith.mulf %10, %10 : vector<1x32xf32>
    %17 = arith.subf %15, %16 : vector<1x32xf32>
    %18 = vector.broadcast %10 : vector<1x32xf32> to vector<8x32xf32>
    %19 = arith.subf %6, %18 : vector<8x32xf32>
    %cst_12 = arith.constant 9.99999974E-6 : f32
    %20 = vector.broadcast %cst_12 : f32 to vector<1x32xf32>
    %21 = arith.addf %17, %20 : vector<1x32xf32>
    %22 = math.rsqrt %21 : vector<1x32xf32>
    %23 = vector.broadcast %22 : vector<1x32xf32> to vector<8x32xf32>
    %24 = arith.mulf %19, %23 : vector<8x32xf32>
    %cst_13 = arith.constant 0.000000e+00 : f32
    %25 = vector.broadcast %cst_13 : f32 to vector<8x32xf32>
    %26 = arith.cmpf oge, %24, %25 : vector<8x32xf32>
    %cst_14 = arith.constant 0.00999999977 : f32
    %27 = vector.broadcast %cst_14 : f32 to vector<8x32xf32>
    %28 = arith.mulf %27, %24 : vector<8x32xf32>
    %29 = arith.select %26, %24, %28 : vector<8x32xi1>, vector<8x32xf32>
    %c0_15 = arith.constant 0 : index
    %c0_16 = arith.constant 0 : index
    %30 = vector.load %arg5[%c0_15, %c0_16] : memref<32x128xf32, #tpu.memory_space<vmem>>, vector<32x128xf32>
    %cst_17 = arith.constant dense<0.000000e+00> : vector<8x128xf32>
    %31 = tpu.matmul %29, %30, %cst_17 {dimension_numbers = #tpu.dot_dimension_numbers<[1], [0], [0], [1], [0, 0, 1, 1], [], []>} : vector<8x32xf32>, vector<32x128xf32>, vector<8x128xf32> -> vector<8x128xf32>
    %c0_18 = arith.constant 0 : index
    %c0_19 = arith.constant 0 : index
    %32 = vector.load %arg6[%c0_18, %c0_19] : memref<1x128xf32, #tpu.memory_space<vmem>>, vector<1x128xf32>
    %33 = vector.broadcast %32 : vector<1x128xf32> to vector<8x128xf32>
    %34 = arith.addf %31, %33 : vector<8x128xf32>
    %35 = vector.extract_strided_slice %34 {offsets = [0, 0], sizes = [8, 32], strides = [1, 1]} : vector<8x128xf32> to vector<8x32xf32>
    %36 = math.tanh %35 : vector<8x32xf32>
    %37 = vector.extract_strided_slice %34 {offsets = [0, 32], sizes = [8, 32], strides = [1, 1]} : vector<8x128xf32> to vector<8x32xf32>
    %38 = vector.extract_strided_slice %34 {offsets = [0, 64], sizes = [8, 32], strides = [1, 1]} : vector<8x128xf32> to vector<8x32xf32>
    %39 = math.tanh %38 : vector<8x32xf32>
    %40 = vector.extract_strided_slice %34 {offsets = [0, 96], sizes = [8, 32], strides = [1, 1]} : vector<8x128xf32> to vector<8x32xf32>
    %c0_20 = arith.constant 0 : index
    %c0_21 = arith.constant 0 : index
    %41 = vector.load %arg2[%c0_20, %c0_21] : memref<8x1xf32, #tpu.memory_space<vmem>>, vector<8x1xf32>
    %42 = arith.addf %40, %37 : vector<8x32xf32>
    %43 = vector.broadcast %41 : vector<8x1xf32> to vector<8x32xf32>
    %44 = arith.mulf %42, %43 : vector<8x32xf32>
    %45 = arith.negf %44 : vector<8x32xf32>
    %46 = math.exp %45 : vector<8x32xf32>
    %cst_22 = arith.constant 1.000000e+00 : f32
    %47 = vector.broadcast %cst_22 : f32 to vector<8x32xf32>
    %48 = arith.addf %47, %46 : vector<8x32xf32>
    %49 = arith.divf %47, %48 : vector<8x32xf32>
    %cst_23 = arith.constant 1.000000e+00 : f32
    %50 = vector.broadcast %cst_23 : f32 to vector<8x32xf32>
    %51 = arith.subf %50, %49 : vector<8x32xf32>
    %52 = arith.mulf %39, %51 : vector<8x32xf32>
    %53 = arith.mulf %36, %49 : vector<8x32xf32>
    %54 = arith.addf %52, %53 : vector<8x32xf32>
    %c0_24 = arith.constant 0 : index
    %c0_25 = arith.constant 0 : index
    %55 = vector.load %arg7[%c0_24, %c0_25] : memref<8x32xf32, #tpu.memory_space<vmem>>, vector<8x32xf32>
    tpu.vector_store %arg7[%c0_24, %c0_25], %54 {strides = array<i32>} : memref<8x32xf32, #tpu.memory_space<vmem>>, vector<8x32xf32>,
    return
  }
}

</mosaic_0001>

<bundles_post_ra>
// kernel: tpu_custom_call.1
= control target key start
LH: loop header
LB: loop body
LE: loop exit
PB: predicated region body
PF: predicated region fallthrough
CT: control target
= control target key end

     0   :  { %12 = vsyncpa [#allocation3], 0  ;;  %s741_s0 = inlined_call_operand.hbm [shape: f32[8,16], index: 0, kind: input, shape index: {}]   ;;  %s742_s1 = inlined_call_operand.hbm [shape: f32[8,32], index: 1, kind: input, shape index: {}]   ;;  %s743_s2 = inlined_call_operand.vmem [shape: f32[8,1], index: 2, kind: input, shape index: {}]   ;;  %s744_s3 = inlined_call_operand.vmem [shape: f32[16,32], index: 3, kind: input, shape index: {}]   ;;  %s745_s4 = inlined_call_operand.hbm [shape: f32[32,32], index: 4, kind: input, shape index: {}]   ;;  %s746_s5 = inlined_call_operand.hbm [shape: f32[32,128], index: 5, kind: input, shape index: {}]   ;;  %s747_s6 = inlined_call_operand.vmem [shape: f32[1,128], index: 6, kind: input, shape index: {}]   ;;  %s748_s7 = inlined_call_operand.hbm [shape: f32[8,32], index: 7, kind: output, shape index: {}]  }
   0x1   :  { %13 = vsyncpa [#allocation6], 0 }
   0x2   :  { %14 = vsyncpa [#allocation9], 0 }
   0x3   :  { %15 = vsyncpa [#allocation4], 0  ;;  %s607_s24 = smov [#allocation5]   ;;  %s608_s26 = smov [#allocation2]  }
   0x4   :  { %s32_s25 = sshll.u32 %s607_s24, 4  ;;  %s22_s27 = sshll.u32 %s608_s26, 4  ;;  %s33_s25 = int_to_ptr.vmem [resolvable:$true] %s32_s25  ;;  %s23_s27 = int_to_ptr.vmem [resolvable:$true] %s22_s27 }
   0x5   :  { %s489_s30 = scalar_lea.hbm %s742_s1, 128 }
   0x6   :  { %p490_p0 = scmp.ne.s32.totalorder %s742_s1, %s489_s30  ;;  %p493_p1 = scmp.lt.u32.totalorder %s489_s30, %s742_s1 }
   0x8   :  { %p495_p2 = pnand %p493_p1, %p490_p0 }
   0xa   :  { %498 = shalt.err (!%p495_p2)
}
   0xb   :  { %s499_s12 = scalar_lea.vmem %s33_s25, 128  ;;  %p504_p4 = scmp.lt.s32.totalorder %s33_s25, %s33_s25 }
   0xc   :  { %p500_p3 = scmp.ne.s32.totalorder %s33_s25, %s499_s12  ;;  %p505_p5 = scmp.lt.s32.totalorder %s499_s12, %s499_s12 }
   0xe   :  { %p506_p6 = por %p505_p5, %p504_p4 }
  0x10   :  { %p507_p7 = pnand %p506_p6, %p500_p3 }
  0x12   :  { %510 = shalt.err (!%p507_p7)
}
  0x13   :  { %35 = dma.hbm_to_vmem [thread:$0]  %s742_s1, 128, %s33_s25, [#allocation6]  }
  0x14   :  { %s511_s17 = scalar_lea.hbm %s741_s0, 128 }
  0x15   :  { %p512_p8 = scmp.ne.s32.totalorder %s741_s0, %s511_s17  ;;  %p515_p9 = scmp.lt.u32.totalorder %s511_s17, %s741_s0 }
  0x17   :  { %p517_p10 = pnand %p515_p9, %p512_p8 }
  0x19   :  { %520 = shalt.err (!%p517_p10)
}
  0x1a   :  { %s521_s22 = scalar_lea.vmem %s23_s27, 128  ;;  %p526_p12 = scmp.lt.s32.totalorder %s23_s27, %s23_s27 }
  0x1b   :  { %p522_p11 = scmp.ne.s32.totalorder %s23_s27, %s521_s22  ;;  %p527_p13 = scmp.lt.s32.totalorder %s521_s22, %s521_s22 }
  0x1d   :  { %p528_p0 = por %p527_p13, %p526_p12 }
  0x1f   :  { %p529_p1 = pnand %p528_p0, %p522_p11 }
  0x21   :  { %532 = shalt.err (!%p529_p1)
}
  0x22   :  { %25 = dma.hbm_to_vmem [thread:$0]  %s741_s0, 128, %s23_s27, [#allocation3]  }
  0x23   :  { %s609_s24 = smov [#allocation7]   ;;  %s533_s29 = scalar_lea.hbm %s745_s4, 512 }
  0x24   :  { %s45_s25 = sshll.u32 %s609_s24, 4  ;;  %p534_p2 = scmp.ne.s32.totalorder %s745_s4, %s533_s29  ;;  %s46_s25 = int_to_ptr.vmem [resolvable:$true] %s45_s25 }
  0x25   :  { %p537_p3 = scmp.lt.u32.totalorder %s533_s29, %s745_s4 }
  0x27   :  { %p539_p4 = pnand %p537_p3, %p534_p2 }
  0x29   :  { %542 = shalt.err (!%p539_p4)
}
  0x2a   :  { %s543_s11 = scalar_lea.vmem %s46_s25, 512  ;;  %p548_p6 = scmp.lt.s32.totalorder %s46_s25, %s46_s25 }
  0x2b   :  { %p544_p5 = scmp.ne.s32.totalorder %s46_s25, %s543_s11  ;;  %p549_p7 = scmp.lt.s32.totalorder %s543_s11, %s543_s11 }
  0x2d   :  { %p550_p8 = por %p549_p7, %p548_p6 }
  0x2f   :  { %p551_p9 = pnand %p550_p8, %p544_p5 }
  0x31   :  { %554 = shalt.err (!%p551_p9)
}
  0x32   :  { %s610_s0 = smov 128   ;;  %s611_s27 = smov 8  }
  0x33   :  { %51 = dma.hbm_to_vmem [thread:$0]  %s745_s4, 512, %s46_s25, [#allocation6], %s610_s0, %s610_s0, %s611_s27  }
  0x34   :  { %s612_s14 = smov [#allocation8]   ;;  %s555_s18 = scalar_lea.hbm %s746_s5, 512 }
  0x35   :  { %s57_s15 = sshll.u32 %s612_s14, 4  ;;  %p556_p10 = scmp.ne.s32.totalorder %s746_s5, %s555_s18  ;;  %s58_s15 = int_to_ptr.vmem [resolvable:$true] %s57_s15 }
  0x36   :  { %p559_p11 = scmp.lt.u32.totalorder %s555_s18, %s746_s5 }
  0x38   :  { %p561_p12 = pnand %p559_p11, %p556_p10 }
  0x3a   :  { %564 = shalt.err (!%p561_p12)
}
  0x3b   :  { %s565_s1 = scalar_lea.vmem %s58_s15, 512  ;;  %p570_p0 = scmp.lt.s32.totalorder %s58_s15, %s58_s15 }
  0x3c   :  { %p566_p13 = scmp.ne.s32.totalorder %s58_s15, %s565_s1  ;;  %p571_p1 = scmp.lt.s32.totalorder %s565_s1, %s565_s1 }
  0x3e   :  { %p572_p2 = por %p571_p1, %p570_p0 }
  0x40   :  { %p573_p3 = pnand %p572_p2, %p566_p13 }
  0x42   :  { %576 = shalt.err (!%p573_p3)
}
  0x43   :  { %63 = dma.hbm_to_vmem [thread:$0]  %s746_s5, 512, %s58_s15, [#allocation9], %s610_s0, %s610_s0, %s611_s27  }
  0x44   :  { %599 = dma.done.wait [#allocation3], 128  }
  0x45   :  { %600 = vsyncadd [#allocation3], 4294967168 }
  0x46   :  { %601 = dma.done.wait [#allocation6], 640  }
  0x47   :  { %602 = vsyncadd [#allocation6], 4294966656 }
  0x48   :  { %603 = dma.done.wait [#allocation9], 512  }
  0x49   :  { %604 = vsyncadd [#allocation9], 4294966784  ;;  %v613_v0 = vmov 0.0|0.0   ;;  %vm614_vm0 = vmmov 0   ;;  %v615_v1 = vmov 0.0   ;;  %v82_v2 = vld [vmem:[#allocation7] sm:$0xff] }
  0x4a   :  { %449 = vmatprep.subr.bf16.mxu0 %v613_v0  ;;  %428 = vmatprep.mubr.msk.f32.mxu0 %vm614_vm0, %v615_v1  ;;  %v83_v3 = vld [vmem:[#allocation7 + $0x8] sm:$0xff]  ;;  %v84_v4 = vld [vmem:[#allocation7 + $0x10] sm:$0xff]  ;;  %v85_v6 = vld [vmem:[#allocation7 + $0x18] sm:$0xff]  ;;  %vm86_vm1 = vcmask 261120   ;;  %vm160_vm2 = vcmask 130048   ;;  %v616_v20 = vmov 0  }
  0x4b   :  { %458 = vmatprep.subr.bf16.mxu1 %v613_v0  ;;  %446 = vmatprep.mubr.msk.f32.mxu1 %vm614_vm0, %v615_v1  ;;  %v450_v5 = vpack.c.bf16 %v83_v3, %v82_v2  ;;  %v453_v7 = vpack.c.bf16 %v85_v6, %v84_v4  ;;  %v79_v8 = vld [vmem:[%s744_s3] sm:$0xff]  ;;  %v80_v9 = vld [vmem:[%s744_s3 + $0x8] sm:$0xff]  ;;  %v261_v13 = vld [vmem:[#allocation8] sm:$0xff]  ;;  %s617_s30 = smov 64   ;;  %s618_s8 = smov 32  }
  0x4c   :  { %v81_v10 = vld [vmem:[#allocation5] sm:$0xff]  ;;  %v456_v11 = vpack.c.bf16 %v80_v9, %v79_v8  ;;  %v78_v12 = vld [vmem:[#allocation2] sm:$0xff]  ;;  %v262_v14 = vld [vmem:[#allocation8 + $0x8] sm:$0xff]  ;;  %480 = vset.pattern.permute.xlu0 %v616_v20  ;;  %s619_s9 = smov 96  }
  0x4d   :  { %451 = vmatpush3.bf16.msra.mxu0 %v450_v5  ;;  %v459_v15 = vpack.c.bf16 %v262_v14, %v261_v13  ;;  %v263_v16 = vld [vmem:[#allocation8 + $0x10] sm:$0xff]  ;;  %v264_v17 = vld [vmem:[#allocation8 + $0x18] sm:$0xff] }
  0x4e   :  { %452 = vmatprep.subr.bf16.mxu0 %v613_v0  ;;  %v462_v18 = vpack.c.bf16 %v264_v17, %v263_v16  ;;  %v346_v19 = vld [vmem:[%s743_s2] sm:$0xff] }
  0x4f   :  { %460 = vmatpush3.bf16.msra.mxu1 %v459_v15  ;;  %354 = vperm.xlu0 %480, %v346_v19   ;;  %v404_v48 = vld [vmem:[%s747_s6] ss:$0 sm:$0xff]  ;;  %s620_s6 = smov [#allocation10]  }
  0x50   :  { %461 = vmatprep.subr.bf16.mxu1 %v613_v0  ;;  %s391_s10 = sshll.u32 %s620_s6, 4  ;;  %s392_s10 = int_to_ptr.vmem [resolvable:$true] %s391_s10 }
  0x51   :  { %454 = vmatpush3.bf16.msra.mxu0 %v453_v7  ;;  %s577_s11 = scalar_lea.vmem %s392_s10, 128  ;;  %p582_p5 = scmp.lt.s32.totalorder %s392_s10, %s392_s10 }
  0x52   :  { %455 = vmatprep.subr.bf16.mxu0 %v613_v0  ;;  %p578_p4 = scmp.ne.s32.totalorder %s392_s10, %s577_s11  ;;  %p583_p6 = scmp.lt.s32.totalorder %s577_s11, %s577_s11 }
  0x53   :  { %463 = vmatpush3.bf16.msra.mxu1 %v462_v18 }
  0x54   :  { %429 = vmatmul.mubr.msk.f32.vlgmr.msra.gmra.mrb[0].mxu0 %vm86_vm1, %v81_v10  ;;  %p584_p7 = por %p583_p6, %p582_p5 }
  0x55   :  { %457 = vmatpush3.bf16.msra.mxu0 %v456_v11  ;;  %435 = vmatprep.mubr.msk.f32.mxu0 %vm614_vm0, %v615_v1 }
  0x56   :  { %p585_p8 = pnand %p584_p7, %p578_p4 }
  0x5c   :  { %436 = vmatmul.mubr.msk.f32.vlgmr.msra.gmra.mrb[0].mxu0 %vm160_vm2, %v78_v12 }
  0xce   :  { %v355_v52 = vpop.permute.xlu0 %354 }
 0x12f   :  { %v230_v21 = vpop.f32.mrb[0].mxu0 }
 0x130   :  { %v234_v22 = vsel %vm86_vm1, %v230_v21, 0.0  ;;  %v243_v23 = vmul.f32 %v230_v21, %v230_v21  ;;  %v437_v24 = vpop.f32.mrb[1].mxu0 }
 0x131   :  { %v235_v25 = vrot.slane %v234_v22, 4 }
 0x132   :  { %v244_v26 = vsel %vm86_vm1, %v243_v23, 0.0 }
 0x133   :  { %v236_v27 = vadd.f32 %v235_v25, %v234_v22  ;;  %v245_v28 = vrot.slane %v244_v26, 4 }
 0x135   :  { %v237_v29 = vrot.slane %v236_v27, 2  ;;  %v246_v30 = vadd.f32 %v245_v28, %v244_v26 }
 0x137   :  { %v238_v31 = vadd.f32 %v237_v29, %v236_v27  ;;  %v247_v32 = vrot.slane %v246_v30, 2 }
 0x139   :  { %v239_v33 = vrot.slane %v238_v31, 1  ;;  %v248_v34 = vadd.f32 %v247_v32, %v246_v30 }
 0x13b   :  { %v240_v35 = vadd.f32 %v239_v33, %v238_v31  ;;  %v249_v36 = vrot.slane %v248_v34, 1 }
 0x13d   :  { %v242_v37 = vmul.f32 0.125, %v240_v35  ;;  %v250_v38 = vadd.f32 %v249_v36, %v248_v34 }
 0x13f   :  { %v251_v39 = vmul.f32 0.125, %v250_v38  ;;  %v252_v40 = vmul.f32 %v242_v37, %v242_v37  ;;  %v254_v43 = vsub.f32 %v230_v21, %v242_v37 }
 0x141   :  { %v253_v41 = vsub.f32 %v251_v39, %v252_v40 }
 0x143   :  { %v255_v42 = vadd.f32 1e-05, %v253_v41 }
 0x145   :  { %481 = vrsqrt.f32 %v255_v42 }
 0x14f   :  { %v482_v44 = vpop.eup %481 }
 0x150   :  { %v257_v45 = vmul.f32 %v482_v44, %v254_v43 }
 0x152   :  { %vm258_vm3 = vcmp.ge.f32.partialorder %v257_v45, 0.0  ;;  %v259_v46 = vmul.f32 0.01, %v257_v45 }
 0x154   :  { %v260_v47 = vsel %vm258_vm3, %v257_v45, %v259_v46 }
 0x155   :  { %447 = vmatmul.mubr.msk.f32.vlgmr.msra.gmra.mrb[0].mxu1 %vm86_vm1, %v260_v47 }
 0x228   :  { %v341_v49 = vpop.f32.mrb[0].mxu1 }
 0x229   :  { %v342_v50 = vadd.f32 %v404_v48, %v341_v49  ;;  %v448_v51 = vpop.f32.mrb[1].mxu1 }
 0x22b   :  { %348 = vrot.lane.b32.xlu0 %v342_v50, %s617_s30 }
 0x29d   :  { %v349_v53 = vpop.permute.xlu0 %348 }
 0x29e   :  { %v351_v54 = vadd.f32 %v349_v53, %v342_v50 }
 0x2a0   :  { %v357_v55 = vmul.f32 %v355_v52, %v351_v54 }
 0x2a2   :  { %v406_v56 = vmul.f32 -1.442695, %v357_v55 }
 0x2a4   :  { %483 = vpow2.f32 %v406_v56 }
 0x2ae   :  { %v484_v57 = vpop.eup %483 }
 0x2af   :  { %v361_v58 = vadd.f32 1.0, %v484_v57 }
 0x2b1   :  { %485 = vrcp.f32 %v361_v58 }
 0x2b2   :  { %487 = vtanh.f32 %v342_v50 }
 0x2bb   :  { %v486_v59 = vpop.eup %485 }
 0x2bc   :  { %371 = vrot.lane.b32.xlu1 %v486_v59, %s618_s8  ;;  %v364_v60 = vsub.f32 1.0, %v486_v59  ;;  %v488_v61 = vpop.eup %487 }
 0x2c0   :  { %366 = vrot.lane.b32.xlu1 %v364_v60, %s619_s9 }
 0x32e   :  { %v372_v62 = vpop.permute.xlu1 %371 }
 0x32f   :  { %v374_v63 = vmul.f32 %v488_v61, %v372_v62 }
 0x331   :  { %376 = vrot.lane.b32.xlu0 %v374_v63, %s617_s30 }
 0x332   :  { %v367_v0 = vpop.permute.xlu1 %366 }
 0x333   :  { %v369_v1 = vmul.f32 %v488_v61, %v367_v0 }
 0x3a3   :  { %v377_v2 = vpop.permute.xlu0 %376 }
 0x3a4   :  { %v379_v3 = vadd.f32 %v377_v2, %v369_v1 }
 0x3a6   :  { %381 = vrot.lane.b32.xlu1 %v379_v3, %s617_s30 }
 0x418   :  { %v382_v4 = vpop.permute.xlu1 %381 }
 0x419   :  { %384 = vst.msk [vmem:[#allocation10] sm:$0xff] %vm86_vm1, %v382_v4 }
 0x41a   :  { %588 = shalt.err (!%p585_p8)
}
 0x41b   :  { %s589_s12 = scalar_lea.hbm %s748_s7, 128 }
 0x41c   :  { %p590_p9 = scmp.ne.s32.totalorder %s748_s7, %s589_s12  ;;  %p593_p10 = scmp.lt.u32.totalorder %s589_s12, %s748_s7 }
 0x41e   :  { %p595_p11 = pnand %p593_p10, %p590_p9 }
 0x420   :  { %598 = shalt.err (!%p595_p11)
}
 0x421   :  { %394 = dma.vmem_to_hbm [thread:$0]  %s392_s10, 128, %s748_s7, [#allocation4]  }
 0x422   :  { %605 = dma.done.wait [#allocation4], 128  }
 0x423   :  { %606 = vsyncadd [#allocation4], 4294967168 }
 0x424   :  { %398 = vsyncpa [#allocation3], 1 }
 0x425   :  { %399 = vsyncpa [#allocation6], 1 }
 0x426   :  { %400 = vsyncpa [#allocation9], 1 }
 0x427   :  { %401 = vsyncpa [#allocation4], 1 }

</bundles_post_ra>
